<compile_context>
chip_gen: v5e
topology: v5e:2x2
jax: 0.10.0
libtpu: 0.0.40
codegen_flags: <defaults>
</compile_context>

<pallas_src>
import functools

import jax
import jax.numpy as jnp
from jax import lax
from jax.experimental import pallas as pl
from jax.experimental.pallas import tpu as pltpu

TAU = 1e-6          # == self._tau * self.tau in the reference module
HARD = False

# rsum sentinel for padded j columns: logits become ~-8.5e37 -> exp underflows to 0.
_MASK_RSUM = 0.25 * float(jnp.finfo(jnp.float32).max)


def _round_up(x, m):
    return ((x + m - 1) // m) * m


def _pick_tile(n, unit, cap):
    """Largest multiple of `unit` that divides n and is <= max(unit, cap)."""
    cap = max(unit, cap)
    best = unit
    t = unit
    while t <= n and t <= cap:
        if n % t == 0:
            best = t
        t += unit
    return min(best, n)


def _vmem_limit_bytes():
    """~75% of physical VMEM (v5e/v6e: 128 MiB, v7x: 64 MiB), with a safe fallback."""
    try:
        cap = int(pltpu.get_tpu_info().vmem_capacity_bytes)
    except Exception:
        cap = 64 * 1024 * 1024
    return max(32 * 1024 * 1024, (cap * 3) // 4)


# ----------------------------------------------------------------------------
# Kernel 1: rsum[b, j] = sum_k |scores[b, j] - scores[b, k]| / tau
# ----------------------------------------------------------------------------
def _rsum_kernel(scores_ref, rsum_ref, *, n_true, n_pad, tile_k, inv_tau, unroll):
    tb, tile_j = rsum_ref.shape
    j0 = pl.multiple_of(pl.program_id(1) * tile_j, 128)
    s_j = scores_ref[:, pl.ds(j0, tile_j)]                       # (TB, TJ)  j on lanes
    padded = n_pad != n_true

    def body(kc, acc):
        k0 = pl.multiple_of(kc * tile_k, tile_k)
        chunk = scores_ref[:, pl.ds(k0, tile_k)]                 # (TB, TK)
        # (TB, TK, TJ): j on lanes, k on sublanes -> lane-dense, cheap reduction.
        diff = jnp.abs(chunk[:, :, None] - s_j[:, None, :])
        if padded:
            kcols = k0 + lax.broadcasted_iota(jnp.int32, (1, tile_k, 1), 1)
            diff = jnp.where(kcols < n_true, diff, 0.0)          # padded k -> 0
        return acc + jnp.sum(diff, axis=1)                       # sublane reduce

    acc = lax.fori_loop(0, n_pad // tile_k, body,
                        jnp.zeros((tb, tile_j), jnp.float32), unroll=unroll)
    out = acc * inv_tau                                          # fold 1/tau here
    if padded:
        jcols = j0 + lax.broadcasted_iota(jnp.int32, (1, tile_j), 1)
        out = jnp.where(jcols < n_true, out, _MASK_RSUM)         # kill padded j cols
    rsum_ref[...] = out


# ----------------------------------------------------------------------------
# Kernel 2: online softmax over j, fused with the (P_hat @ scores) reduction
# ----------------------------------------------------------------------------
def _neuralsort_kernel(scores_ref, rsum_ref, out_ref, *, n_true, n_pad, tile_j,
                       inv_tau, hard, unroll):
    tb, tile_i = out_ref.shape

    # Row scaling for this i-tile, 1/tau folded in; hoisted out of the j-loop.
    i0 = (pl.program_id(1) * tile_i).astype(jnp.float32)
    i_idx = lax.broadcasted_iota(jnp.float32, (tile_i, 1), 0) + i0
    scaling_b = (((n_true - 1) - 2.0 * i_idx) * inv_tau)[None, :, :]    # (1, TI, 1)

    n_chunks = n_pad // tile_j
    m0 = jnp.full((tb, tile_i, 1), -jnp.inf, jnp.float32)

    if hard:
        # TODO(synk): straight-through gradient ((P - P_hat).detach() + P_hat) is
        # not reproduced; this implements the forward value (scores at argmax).
        def body(jc, carry):
            m_run, hard_val = carry
            j0 = pl.multiple_of(jc * tile_j, 128)
            s_j = scores_ref[:, pl.ds(j0, tile_j)]
            r_j = rsum_ref[:, pl.ds(j0, tile_j)]
            logits = s_j[:, None, :] * scaling_b - r_j[:, None, :]
            cmax = jnp.max(logits, axis=-1, keepdims=True)
            col = lax.broadcasted_iota(jnp.int32, logits.shape, 2)
            first = jnp.min(jnp.where(logits == cmax, col, tile_j),
                            axis=-1, keepdims=True)
            s_b = jnp.broadcast_to(s_j[:, None, :], logits.shape)
            cval = jnp.sum(jnp.where(col == first, s_b, 0.0),
                           axis=-1, keepdims=True)
            hard_val = jnp.where(cmax > m_run, cval, hard_val)
            return jnp.maximum(m_run, cmax), hard_val

        _, out = lax.fori_loop(0, n_chunks, body,
                               (m0, jnp.zeros((tb, tile_i, 1), jnp.float32)),
                               unroll=unroll)
    else:
        def body(jc, carry):
            m_run, dn = carry                                    # (TB,TI,1), (TB,TI,2)
            j0 = pl.multiple_of(jc * tile_j, 128)
            s_j = scores_ref[:, pl.ds(j0, tile_j)]               # (TB, TJ)
            r_j = rsum_ref[:, pl.ds(j0, tile_j)]                 # (TB, TJ) already /tau
            # TODO(synk): the logits mul/sub could also be fused into the MXU
            # (K=2 matmul) if a bundle dump shows VALU saturated.
            logits = s_j[:, None, :] * scaling_b - r_j[:, None, :]   # (TB, TI, TJ)
            cmax = jnp.max(logits, axis=-1, keepdims=True)       # only XLU reduce left
            m_new = jnp.maximum(m_run, cmax)
            # TODO(synk): bf16 exp on v6e/v7x EUP (~2x) skipped pending a numerics
            # check; v5e has no bf16 EUP so f32 is kept everywhere.
            e = jnp.exp(logits - m_new)                          # EUP
            # Offload both j-reductions (den, num) to the MXU:  e @ [1, s_j].
            rhs = jnp.stack([jnp.ones_like(s_j), s_j], axis=-1)  # (TB, TJ, 2)
            part = jnp.einsum('bij,bjc->bic', e, rhs,
                              preferred_element_type=jnp.float32)    # (TB, TI, 2)
            alpha = jnp.exp(m_run - m_new)
            return m_new, alpha * dn + part

        _, dn = lax.fori_loop(0, n_chunks, body,
                              (m0, jnp.zeros((tb, tile_i, 2), jnp.float32)),
                              unroll=unroll)
        # Exact divide (only B*N of them); approx reciprocal can miss atol=1e-4.
        out = dn[:, :, 1:2] / dn[:, :, 0:1]

    out_ref[...] = out[:, :, 0].astype(out_ref.dtype)


# ----------------------------------------------------------------------------
# Wrapper
# ----------------------------------------------------------------------------
def neural_sort(scores, *, tau=TAU, hard=HARD):
    """scores: (B, N) -> (B, N) == P_hat @ scores (descending soft sort)."""
    b, n = scores.shape
    scores = scores.astype(jnp.float32)
    inv_tau = 1.0 / float(tau)

    # Pad N to a multiple of 128 -> lane-dense slabs for any N (prime, 200, ...).
    n_pad = _round_up(n, 128)
    scores_p = jnp.pad(scores, ((0, 0), (0, n_pad - n))) if n_pad != n else scores

    # Batch tile: 2nd-to-last block dim must be a multiple of 8 or the full dim.
    tile_b = 8 if (b > 8 and b % 8 == 0) else b
    tile_i = 128
    # TODO(synk): for N << 128 only N/128 lanes do useful work; packing several
    # batch rows into the lane dimension would restore lane density for tiny N.

    vmem_limit = _vmem_limit_bytes()
    # Per-chunk working-set budget (~3 temporaries of the chunk shape); a bit
    # larger on 128 MiB parts (v5e/v6e) than on 64 MiB v7x.
    chunk_budget = (8 if vmem_limit >= 64 * 1024 * 1024 else 4) * 1024 * 1024
    tile_j = _pick_tile(n_pad, 128, chunk_budget // (4 * 3 * tile_b * tile_i))
    tile_jr = _pick_tile(n_pad, 128, chunk_budget // (4 * 3 * tile_b * 128))
    tile_k = min(_pick_tile(n_pad, 8, chunk_budget // (4 * 3 * tile_b * tile_jr)), 128)

    mosaic_params = pltpu.CompilerParams(
        dimension_semantics=("parallel", "parallel"),
        vmem_limit_bytes=vmem_limit)

    # ---- kernel 1: rsum pre-pass ------------------------------------------------
    rsum_kernel = functools.partial(
        _rsum_kernel, n_true=n, n_pad=n_pad, tile_k=tile_k, inv_tau=inv_tau,
        unroll=2 if n_pad // tile_k >= 2 else 1)
    rsum = pl.pallas_call(
        rsum_kernel,
        out_shape=jax.ShapeDtypeStruct((b, n_pad), jnp.float32),
        grid_spec=pltpu.PrefetchScalarGridSpec(
            num_scalar_prefetch=0,
            grid=(b // tile_b, n_pad // tile_jr),
            in_specs=[pl.BlockSpec((tile_b, n_pad), lambda bt, jt: (bt, 0))],
            out_specs=pl.BlockSpec((tile_b, tile_jr), lambda bt, jt: (bt, jt))),
        compiler_params=mosaic_params,
        cost_estimate=pl.CostEstimate(
            flops=3 * b * n_pad * n_pad,
            transcendentals=0,
            bytes_accessed=8 * b * n_pad),
    )(scores_p)

    # ---- kernel 2: online softmax with fused numerator --------------------------
    main_kernel = functools.partial(
        _neuralsort_kernel, n_true=n, n_pad=n_pad, tile_j=tile_j,
        inv_tau=inv_tau, hard=hard,
        unroll=2 if n_pad // tile_j >= 2 else 1)
    out = pl.pallas_call(
        main_kernel,
        out_shape=jax.ShapeDtypeStruct((b, n_pad), jnp.float32),
        grid_spec=pltpu.PrefetchScalarGridSpec(
            num_scalar_prefetch=0,
            grid=(b // tile_b, n_pad // tile_i),
            in_specs=[pl.BlockSpec((tile_b, n_pad), lambda bt, it: (bt, 0)),
                      pl.BlockSpec((tile_b, n_pad), lambda bt, it: (bt, 0))],
            out_specs=pl.BlockSpec((tile_b, tile_i), lambda bt, it: (bt, it))),
        compiler_params=mosaic_params,
        cost_estimate=pl.CostEstimate(
            flops=11 * b * n_pad * n_pad,
            transcendentals=b * n_pad * n_pad,
            bytes_accessed=12 * b * n_pad),
    )(scores_p, rsum)

    return out[:, :n] if n_pad != n else out


# ----------------------------------------------------------------------------
# Plain-JAX references (f32 mirror of the PyTorch forward)
# ----------------------------------------------------------------------------
def _p_max(scores):
    s = scores[..., None].astype(jnp.float32)                    # (B, N, 1)
    n = s.shape[1]
    one = jnp.ones((n, 1), jnp.float32)
    a = jnp.abs(s - jnp.transpose(s, (0, 2, 1)))                 # (B, N, N)
    bmat = (a @ one) @ one.T                                     # (B, N, N)
    scaling = (n + 1 - 2 * (jnp.arange(n) + 1)).astype(jnp.float32)
    c = s @ scaling[None, :]                                     # (B, N, N)
    return jnp.transpose(c - bmat, (0, 2, 1))


def neural_sort_reference(scores, *, tau=TAU):
    p_hat = jax.nn.softmax(_p_max(scores) / tau, axis=-1)
    return (p_hat @ scores[..., None].astype(jnp.float32))[:, :, 0]


def neural_sort_hard_reference(scores):
    idx = jnp.argmax(_p_max(scores), axis=-1)                    # (B, N)
    return jnp.take_along_axis(scores.astype(jnp.float32), idx, axis=1)


if __name__ == "__main__":
    key = jax.random.PRNGKey(0)
    B, N = 2, 16
    scores = jax.random.normal(key, (B, N), dtype=jnp.float32)

    out = jax.block_until_ready(neural_sort(scores))
    ref = neural_sort_reference(scores)
    assert out.shape == (B, N)
    assert jnp.allclose(out, ref, atol=1e-4, rtol=1e-4), (out, ref)

    # hard=True forward value (straight-through gradient not implemented).
    out_h = jax.block_until_ready(neural_sort(scores, hard=True))
    ref_h = neural_sort_hard_reference(scores)
    assert jnp.allclose(out_h, ref_h, atol=1e-5, rtol=1e-5), (out_h, ref_h)

    print("KERNEL_OK")
</pallas_src>

<mosaic_0001>
module attributes {stable_mosaic.version = 11 : i64} {
  func.func @_rsum_kernel(%arg0: i32, %arg1: i32, %arg2: memref<2x128xf32, #tpu.memory_space<vmem>>, %arg3: memref<2x128xf32, #tpu.memory_space<vmem>>) attributes {dimension_semantics = [#tpu.dimension_semantics<parallel>, #tpu.dimension_semantics<parallel>], iteration_bounds = array<i64: 1, 1>, scalar_prefetch = 0 : i64, scratch_operands = 0 : i64, tpu.core_type = #tpu.core_type<tc>, window_params = [{transform_indices = @transform_0, window_bounds = array<i64: 2, 128>}, {transform_indices = @transform_1, window_bounds = array<i64: 2, 128>}]} {
    %c128_i32 = arith.constant 128 : i32
    %0 = arith.muli %arg1, %c128_i32 : i32
    %1 = tpu.assume_multiple %0, 128 : i32
    %c0 = arith.constant 0 : index
    %2 = arith.index_cast %1 : i32 to index
    %3 = vector.load %arg2[%c0, %2] : memref<2x128xf32, #tpu.memory_space<vmem>>, vector<2x128xf32>
    %cst = arith.constant 0.000000e+00 : f32
    %4 = vector.broadcast %cst : f32 to vector<2x128xf32>
    %c0_i32 = arith.constant 0 : i32
    %c128_i32_0 = arith.constant 128 : i32
    %5 = arith.muli %c0_i32, %c128_i32_0 : i32
    %6 = tpu.assume_multiple %5, 128 : i32
    %c0_1 = arith.constant 0 : index
    %7 = arith.index_cast %6 : i32 to index
    %8 = vector.load %arg2[%c0_1, %7] : memref<2x128xf32, #tpu.memory_space<vmem>>, vector<2x128xf32>
    %9 = vector.shape_cast %8 : vector<2x128xf32> to vector<2x128x1xf32>
    %10 = vector.shape_cast %3 : vector<2x128xf32> to vector<2x1x128xf32>
    %11 = vector.broadcast %9 : vector<2x128x1xf32> to vector<2x128x128xf32>
    %12 = vector.broadcast %10 : vector<2x1x128xf32> to vector<2x128x128xf32>
    %13 = arith.subf %11, %12 : vector<2x128x128xf32>
    %14 = math.absf %13 : vector<2x128x128xf32>
    %15 = tpu.iota {dimensions = array<i32: 1>} : vector<1x128x1xi32>
    %16 = vector.broadcast %6 : i32 to vector<1x128x1xi32>
    %17 = arith.addi %16, %15 : vector<1x128x1xi32>
    %c16_i32 = arith.constant 16 : i32
    %18 = vector.broadcast %c16_i32 : i32 to vector<1x128x1xi32>
    %19 = arith.cmpi slt, %17, %18 : vector<1x128x1xi32>
    %cst_2 = arith.constant 0.000000e+00 : f32
    %20 = vector.shape_cast %19 : vector<1x128x1xi1> to vector<1x128x1xi1>
    %21 = vector.broadcast %20 : vector<1x128x1xi1> to vector<2x128x128xi1>
    %22 = vector.broadcast %cst_2 : f32 to vector<2x128x128xf32>
    %23 = arith.select %21, %14, %22 : vector<2x128x128xi1>, vector<2x128x128xf32>
    %cst_3 = arith.constant dense<0.000000e+00> : vector<2x128xf32>
    %24 = vector.multi_reduction <add>, %23, %cst_3 [1] : vector<2x128x128xf32> to vector<2x128xf32>
    %25 = arith.addf %4, %24 : vector<2x128xf32>
    %c1_i32 = arith.constant 1 : i32
    %cst_4 = arith.constant 1.000000e+06 : f32
    %26 = vector.broadcast %cst_4 : f32 to vector<2x128xf32>
    %27 = arith.mulf %25, %26 : vector<2x128xf32>
    %28 = tpu.iota {dimensions = array<i32: 1>} : vector<1x128xi32>
    %29 = vector.broadcast %1 : i32 to vector<1x128xi32>
    %30 = arith.addi %29, %28 : vector<1x128xi32>
    %c16_i32_5 = arith.constant 16 : i32
    %31 = vector.broadcast %c16_i32_5 : i32 to vector<1x128xi32>
    %32 = arith.cmpi slt, %30, %31 : vector<1x128xi32>
    %cst_6 = arith.constant 8.50705867E+37 : f32
    %33 = vector.shape_cast %32 : vector<1x128xi1> to vector<1x128xi1>
    %34 = vector.broadcast %33 : vector<1x128xi1> to vector<2x128xi1>
    %35 = vector.broadcast %cst_6 : f32 to vector<2x128xf32>
    %36 = arith.select %34, %27, %35 : vector<2x128xi1>, vector<2x128xf32>
    %c0_7 = arith.constant 0 : index
    %c0_8 = arith.constant 0 : index
    %37 = vector.load %arg3[%c0_7, %c0_8] : memref<2x128xf32, #tpu.memory_space<vmem>>, vector<2x128xf32>
    tpu.vector_store %arg3[%c0_7, %c0_8], %36 {strides = array<i32>} : memref<2x128xf32, #tpu.memory_space<vmem>>, vector<2x128xf32>,
    return
  }
  func.func @transform_0(%arg0: i32, %arg1: i32) -> (i32, i32) {
    %c0_i32 = arith.constant 0 : i32
    %c0_i32_0 = arith.constant 0 : i32
    return %arg0, %c0_i32 : i32, i32
  }
  func.func @transform_1(%arg0: i32, %arg1: i32) -> (i32, i32) {
    %c0_i32 = arith.constant 0 : i32
    return %arg0, %arg1 : i32, i32
  }
}

</mosaic_0001>

<bundles_post_ra>
// kernel: tpu_custom_call.1
= control target key start
LH: loop header
LB: loop body
LE: loop exit
PB: predicated region body
PF: predicated region fallthrough
CT: control target
= control target key end

     0   :  { %6 = vsyncpa [#allocation3], 0  ;;  %s562_s0 = inlined_call_operand.hbm [shape: f32[2,128], index: 0, kind: input, shape index: {}]   ;;  %s563_s1 = inlined_call_operand.hbm [shape: f32[2,128], index: 1, kind: output, shape index: {}]  }
   0x1   :  { %7 = vsyncpa [#allocation4], 0  ;;  %s13_s8 = sshll.u32 %s562_s0, 4  ;;  %s544_s9 = smov [#allocation2]   ;;  %s14_s8 = int_to_ptr.hbm [resolvable:$true] %s13_s8 }
   0x2   :  { %s15_s10 = sshll.u32 %s544_s9, 4  ;;  %s16_s10 = int_to_ptr.vmem [resolvable:$true] %s15_s10 }
   0x3   :  { %18 = dma.hbm_to_vmem [thread:$0]  %s14_s8, 32, %s16_s10, [#allocation3]  }
   0x4   :  { %540 = dma.done.wait [#allocation3], 32  }
   0x5   :  { %541 = vsyncadd [#allocation3], 4294967264  ;;  %v30_v0 = vlaneseq  ;;  %v28_v2 = vld [vmem:[#allocation2] sm:$0x3]  ;;  %vm462_vm0 = vcmask 1041409   ;;  %s545_s0 = smov [#allocation5]  }
   0x6   :  { %v126_v3 = vperm.slane %v28_v2, 1  ;;  %v29_v4 = vperm.slane %v28_v2, 0  ;;  %v27_v6 = vld [vmem:[#allocation2] sm:$0x3]  ;;  %s472_s11 = sshll.u32 %s545_s0, 4  ;;  %s474_s14 = sshll.u32 %s563_s1, 4  ;;  %s473_s11 = int_to_ptr.vmem [resolvable:$true] %s472_s11  ;;  %s475_s14 = int_to_ptr.hbm [resolvable:$true] %s474_s14 }
   0x7   :  { %v31_v1 = vshrl.u32 %v30_v0, 7  ;;  %v224_v8 = vrot.slane %v27_v6, 1  ;;  %v225_v12 = vperm.slane %v27_v6, 0  ;;  %v454_v35 = vand.u32 127, %v30_v0 }
   0x9   :  { %489 = vset.pattern.permute.xlu1 %v31_v1  ;;  %487 = vset.pattern.permute.xlu0 %v31_v1  ;;  %v38_v5 = vadd.s32 8, %v31_v1  ;;  %v122_v7 = vadd.s32 120, %v31_v1  ;;  %v226_v11 = vperm.slane %v224_v8, 0  ;;  %vm457_vm1 = vcmp.lt.s32.totalorder %v454_v35, 16 }
  0x11   :  { %131 = vperm.xlu1 %489, %v126_v3   ;;  %34 = vperm.xlu0 %487, %v29_v4  }
  0x19   :  { %490 = vset.pattern.permute.xlu1 %v38_v5  ;;  %488 = vset.pattern.permute.xlu0 %v38_v5 }
  0x21   :  { %137 = vperm.xlu1 %490, %v126_v3   ;;  %40 = vperm.xlu0 %488, %v29_v4  }
  0x29   :  { %491 = vset.pattern.permute.xlu0 %v122_v7 }
  0x83   :  { %v132_v9 = vpop.permute.xlu1 %131  ;;  %v35_v10 = vpop.permute.xlu0 %34 }
  0x84   :  { %v245_v13 = vsub.f32 %v132_v9, %v226_v11  ;;  %v229_v14 = vsub.f32 %v35_v10, %v225_v12 }
  0x86   :  { %v277_v19 = vand.u32 2147483647, %v245_v13  ;;  %v261_v20 = vand.u32 2147483647, %v229_v14 }
  0x93   :  { %v138_v15 = vpop.permute.xlu1 %137  ;;  %v41_v16 = vpop.permute.xlu0 %40 }
  0x94   :  { %v246_v17 = vsub.f32 %v138_v15, %v226_v11  ;;  %v230_v18 = vsub.f32 %v41_v16, %v225_v12 }
  0x96   :  { %v278_v21 = vand.u32 2147483647, %v246_v17  ;;  %v262_v22 = vand.u32 2147483647, %v230_v18 }
  0x98   :  { %v428_v23 = vadd.f32 %v278_v21, %v277_v19  ;;  %v407_v24 = vadd.f32 %v262_v22, %v261_v20 }
  0x9a   :  { %v443_v25 = vrot.slane %v428_v23, 4  ;;  %v422_v26 = vrot.slane %v407_v24, 4 }
  0x9c   :  { %v444_v27 = vadd.f32 %v443_v25, %v428_v23  ;;  %v423_v28 = vadd.f32 %v422_v26, %v407_v24 }
  0x9e   :  { %v445_v29 = vrot.slane %v444_v27, 2  ;;  %v424_v30 = vrot.slane %v423_v28, 2 }
  0xa0   :  { %v446_v31 = vadd.f32 %v445_v29, %v444_v27  ;;  %v425_v32 = vadd.f32 %v424_v30, %v423_v28 }
  0xa2   :  { %v447_v33 = vrot.slane %v446_v31, 1  ;;  %v426_v34 = vrot.slane %v425_v32, 1 }
  0xa4   :  { %v448_v36 = vadd.f32 %v447_v33, %v446_v31  ;;  %v427_v37 = vadd.f32 %v426_v34, %v425_v32 }
  0xa6   :  { %v452_v38 = vmul.f32 1000000.0, %v448_v36  ;;  %v451_v39 = vmul.f32 1000000.0, %v427_v37 }
  0xa8   :  { %v463_v40 = vsel %vm462_vm0, %v452_v38, %v451_v39 }
  0xa9   :  { %v465_v41 = vsel %vm457_vm1, %v463_v40, 8.5070587e+37 }
  0xaa   :  { %466 = vst [vmem:[#allocation5] sm:$0x3] %v465_v41 }
  0xab   :  { %477 = dma.vmem_to_hbm [thread:$0]  %s473_s11, 32, %s475_s14, [#allocation4]  }
  0xac   :  { %542 = dma.done.wait [#allocation4], 32  }
  0xad   :  { %543 = vsyncadd [#allocation4], 4294967264 }
  0xae   :  { %482 = vsyncpa [#allocation3], 1 }
  0xaf   :  { %483 = vsyncpa [#allocation4], 1 }

</bundles_post_ra>
